<compile_context>
chip_gen: v6e
topology: v6e:2x2x1
jax: 0.10.0
libtpu: 0.0.40
codegen_flags: <defaults>
</compile_context>

<pallas_src>
import functools

import jax
import jax.numpy as jnp
from jax import lax
from jax.experimental import pallas as pl
from jax.experimental.pallas import tpu as pltpu

LANES = 128
SUBLANES = 8
CHUNK_ROWS = 128       # in-kernel processing chunk: 128x128 f32 = 16 vregs/operand
_N_CORE_SPLITS = 2     # shard the reduction over 2 TCs on v7x; harmless on 1-TC chips


def _round_up(x: int, m: int) -> int:
    return ((x + m - 1) // m) * m


def _default_max_tile_rows() -> int:
    """Per-grid-step tile height (rows of 128 lanes), generation aware."""
    try:
        kind = jax.devices()[0].device_kind.lower()
    except Exception:  # pragma: no cover - defensive
        kind = ""
    # Older / smaller-scoped-VMEM parts: keep the 2in x 2buf footprint ~8 MiB.
    if any(v in kind for v in ("v2", "v3", "v4", "v5")):
        return 4096     # 2 MiB / input / tile
    return 8192         # 4 MiB / input / tile (v6e / v7x)


def _charbonnier_sum_kernel(pred_ref, tgt_ref, out_ref, *, eps: float,
                            tile_rows: int, tiles_per_core: int,
                            total_tiles: int, n_valid: int, needs_mask: bool):
    c = pl.program_id(0)            # core-split index ("parallel")
    t = pl.program_id(1)            # tile index within this core ("arbitrary")
    tile_idx = c * tiles_per_core + t

    @pl.when(t == 0)
    def _():
        out_ref[...] = jnp.zeros_like(out_ref)

    eps2 = jnp.float32(eps * eps)
    n_chunks = tile_rows // CHUNK_ROWS

    def accumulate(masked: bool):
        if masked:
            row = lax.broadcasted_iota(jnp.int32, (CHUNK_ROWS, LANES), 0)
            lane = lax.broadcasted_iota(jnp.int32, (CHUNK_ROWS, LANES), 1)
            local_idx = row * LANES + lane            # hoisted out of the loop
            tile_base = tile_idx * (tile_rows * LANES)

        def body(i, acc):
            r0 = pl.multiple_of(i * CHUNK_ROWS, CHUNK_ROWS)
            p = pred_ref[pl.ds(r0, CHUNK_ROWS), :].astype(jnp.float32)
            q = tgt_ref[pl.ds(r0, CHUNK_ROWS), :].astype(jnp.float32)
            d = p - q
            v = jnp.sqrt(d * d + eps2)
            if masked:
                idx = tile_base + r0 * LANES + local_idx
                v = jnp.where(idx < n_valid, v, jnp.float32(0.0))
            # chunk_rows -> 8 sublanes via pure vreg adds (no cross-lane work
            # in the steady state).
            return acc + jnp.sum(v.reshape(-1, SUBLANES, LANES), axis=0)

        acc = lax.fori_loop(0, n_chunks, body,
                            jnp.zeros((SUBLANES, LANES), jnp.float32))
        out_ref[0] += acc

    if needs_mask:
        # Only the last real tile (partial overhang past `rows`) and ghost
        # tiles created by the core split need masking.
        @pl.when(tile_idx < total_tiles - 1)
        def _():
            accumulate(False)

        @pl.when(tile_idx >= total_tiles - 1)
        def _():
            accumulate(True)
    else:
        accumulate(False)


def _charbonnier_sum_aligned(pred2d, tgt2d, epsilon, max_tile_rows=None):
    """Sum of sqrt((p-t)^2 + eps^2) over a (rows, 128) slab (all elements valid)."""
    rows, lanes = pred2d.shape
    assert lanes == LANES

    if max_tile_rows is None:
        max_tile_rows = _default_max_tile_rows()
    max_tile_rows = max(CHUNK_ROWS, _round_up(int(max_tile_rows), CHUNK_ROWS))
    tile_rows = min(max_tile_rows, _round_up(rows, CHUNK_ROWS))
    total_tiles = pl.cdiv(rows, tile_rows)
    n_split = _N_CORE_SPLITS if total_tiles >= _N_CORE_SPLITS else 1
    tiles_per_core = pl.cdiv(total_tiles, n_split)

    n_valid = rows * LANES
    needs_mask = (rows % tile_rows != 0) or (n_split * tiles_per_core != total_tiles)

    def in_map(c, t):
        # Clamp ghost tiles (from the core split) onto the last real tile so all
        # block starts stay in bounds; their contribution is masked to zero.
        return (jnp.minimum(c * tiles_per_core + t, total_tiles - 1), 0)

    itemsize = jnp.dtype(pred2d.dtype).itemsize
    tile_bytes = tile_rows * LANES * itemsize
    # 2 inputs x 2 pipeline buffers + slack; stays <= physical VMEM on all gens.
    vmem_limit = int(min(max(32 << 20, 6 * tile_bytes), 100 << 20))

    kernel = functools.partial(
        _charbonnier_sum_kernel,
        eps=float(epsilon),
        tile_rows=int(tile_rows),
        tiles_per_core=int(tiles_per_core),
        total_tiles=int(total_tiles),
        n_valid=int(n_valid),
        needs_mask=bool(needs_mask),
    )

    partials = pl.pallas_call(
        kernel,
        out_shape=jax.ShapeDtypeStruct((n_split, SUBLANES, LANES), jnp.float32),
        grid_spec=pltpu.PrefetchScalarGridSpec(
            num_scalar_prefetch=0,
            grid=(n_split, tiles_per_core),
            in_specs=[
                pl.BlockSpec((tile_rows, LANES), in_map),
                pl.BlockSpec((tile_rows, LANES), in_map),
            ],
            out_specs=pl.BlockSpec((1, SUBLANES, LANES), lambda c, t: (c, 0, 0)),
        ),
        compiler_params=pltpu.CompilerParams(
            dimension_semantics=("parallel", "arbitrary"),
            vmem_limit_bytes=vmem_limit,
        ),
        cost_estimate=pl.CostEstimate(
            flops=4 * n_valid,
            transcendentals=n_valid,
            bytes_accessed=2 * n_valid * itemsize + n_split * SUBLANES * LANES * 4,
        ),
    )(pred2d, tgt2d)

    # Final ~n_split*1024-element reduce of the per-core partials in plain XLA.
    return jnp.sum(partials, dtype=jnp.float32)


def charbonnier_loss(pred, target, epsilon=1e-3, *, max_tile_rows=None):
    assert pred.shape == target.shape, "pred/target shape mismatch"
    n_elems = int(pred.size)
    if n_elems == 0:
        return jnp.float32(jnp.nan)   # matches torch.mean of an empty tensor

    # Keep the streamed dtype narrow (bf16 stays bf16); only promote if the two
    # inputs disagree.
    dt = jnp.promote_types(pred.dtype, target.dtype)
    pred_flat = pred.reshape(-1).astype(dt)
    tgt_flat = target.reshape(-1).astype(dt)

    n_aligned = (n_elems // LANES) * LANES
    tail = n_elems - n_aligned

    total = jnp.float32(0.0)
    if n_aligned > 0:
        if tail == 0:
            # Free (bitcast) reshape in the common case.
            pred2d = pred_flat.reshape(n_aligned // LANES, LANES)
            tgt2d = tgt_flat.reshape(n_aligned // LANES, LANES)
        else:
            # TODO(synk): this prefix slice materializes a copy (rare path,
            # numel % 128 != 0); a manual-DMA 1-D kernel would avoid it.
            pred2d = lax.slice(pred_flat, (0,), (n_aligned,)).reshape(
                n_aligned // LANES, LANES)
            tgt2d = lax.slice(tgt_flat, (0,), (n_aligned,)).reshape(
                n_aligned // LANES, LANES)
        total = _charbonnier_sum_aligned(pred2d, tgt2d, epsilon, max_tile_rows)

    if tail > 0:
        # <128-element tail handled with plain jnp (negligible work).
        pt = lax.slice(pred_flat, (n_aligned,), (n_elems,)).astype(jnp.float32)
        tt = lax.slice(tgt_flat, (n_aligned,), (n_elems,)).astype(jnp.float32)
        d = pt - tt
        total = total + jnp.sum(jnp.sqrt(d * d + jnp.float32(epsilon * epsilon)))

    return total / jnp.float32(n_elems)


def charbonnier_loss_ref(pred, target, epsilon=1e-3):
    diff = pred.astype(jnp.float32) - target.astype(jnp.float32)
    return jnp.mean(jnp.sqrt(diff * diff + jnp.float32(epsilon * epsilon)))


if __name__ == "__main__":
    key = jax.random.PRNGKey(0)
    ks = jax.random.split(key, 6)

    def check(name, p, t, **kw):
        loss = jax.block_until_ready(charbonnier_loss(p, t, epsilon=1e-3, **kw))
        ref = charbonnier_loss_ref(p, t, epsilon=1e-3)
        assert jnp.allclose(loss, ref, rtol=1e-4, atol=1e-6), (name, loss, ref)

    # Main case: NCHW f32, numel=2048 (128-aligned, single tile).
    p = jax.random.normal(ks[0], (2, 4, 16, 16), dtype=jnp.float32)
    t = jax.random.normal(ks[1], (2, 4, 16, 16), dtype=jnp.float32)
    check("basic_f32", p, t)

    # bf16 inputs stream natively (half the HBM bytes), math upcast in-kernel.
    check("bf16", p.astype(jnp.bfloat16), t.astype(jnp.bfloat16))

    # Ragged numel (% 128 != 0): aligned-prefix kernel + jnp tail.
    pr = jax.random.normal(ks[2], (2, 3, 7, 5), dtype=jnp.float32)
    tr = jax.random.normal(ks[3], (2, 3, 7, 5), dtype=jnp.float32)
    check("ragged", pr, tr)

    # Multi-tile: exercises the 2-way core split, the ghost-tile clamp and the
    # masked partial last tile (tile size forced small to keep the test cheap),
    # plus the same data through the default (large-tile) config.
    pm = jax.random.normal(ks[4], (2, 17, 64, 128), dtype=jnp.float32)
    tm = jax.random.normal(ks[5], (2, 17, 64, 128), dtype=jnp.float32)
    check("multi_tile_split", pm, tm, max_tile_rows=256)
    check("default_tile", pm, tm)

    print("KERNEL_OK")
</pallas_src>

<mosaic_0001>
module attributes {stable_mosaic.version = 11 : i64} {
  func.func @_charbonnier_sum_kernel(%arg0: i32, %arg1: i32, %arg2: memref<128x128xf32, #tpu.memory_space<vmem>>, %arg3: memref<128x128xf32, #tpu.memory_space<vmem>>, %arg4: memref<1x8x128xf32, #tpu.memory_space<vmem>>) attributes {dimension_semantics = [#tpu.dimension_semantics<parallel>, #tpu.dimension_semantics<arbitrary>], iteration_bounds = array<i64: 1, 1>, scalar_prefetch = 0 : i64, scratch_operands = 0 : i64, tpu.core_type = #tpu.core_type<tc>, window_params = [{transform_indices = @transform_0, window_bounds = array<i64: 128, 128>}, {transform_indices = @transform_1, window_bounds = array<i64: 128, 128>}, {transform_indices = @transform_2, window_bounds = array<i64: 1, 8, 128>}]} {
    %c1_i32 = arith.constant 1 : i32
    %0 = arith.muli %arg0, %c1_i32 : i32
    %1 = arith.addi %0, %arg1 : i32
    %c0_i32 = arith.constant 0 : i32
    %2 = arith.cmpi eq, %arg1, %c0_i32 : i32
    %3 = arith.extui %2 : i1 to i32
    %c0_i32_0 = arith.constant 0 : i32
    %4 = arith.cmpi ne, %3, %c0_i32_0 : i32
    scf.if %4 {
      %cst_6 = arith.constant 0.000000e+00 : f32
      %11 = vector.broadcast %cst_6 : f32 to vector<1x8x128xf32>
      %c0 = arith.constant 0 : index
      %c0_7 = arith.constant 0 : index
      %c0_8 = arith.constant 0 : index
      %12 = vector.load %arg4[%c0, %c0_7, %c0_8] : memref<1x8x128xf32, #tpu.memory_space<vmem>>, vector<1x8x128xf32>
      tpu.vector_store %arg4[%c0, %c0_7, %c0_8], %11 {strides = array<i32>} : memref<1x8x128xf32, #tpu.memory_space<vmem>>, vector<1x8x128xf32>,
    } else {
    }
    %c0_i32_1 = arith.constant 0 : i32
    %5 = arith.cmpi slt, %1, %c0_i32_1 : i32
    %6 = arith.extui %5 : i1 to i32
    %cst = arith.constant 9.99999997E-7 : f32
    %c0_i32_2 = arith.constant 0 : i32
    %7 = arith.cmpi ne, %6, %c0_i32_2 : i32
    scf.if %7 {
      %cst_6 = arith.constant 0.000000e+00 : f32
      %11 = vector.broadcast %cst_6 : f32 to vector<8x128xf32>
      %c0_i32_7 = arith.constant 0 : i32
      %c128_i32 = arith.constant 128 : i32
      %12 = arith.muli %c0_i32_7, %c128_i32 : i32
      %13 = tpu.assume_multiple %12, 128 : i32
      %14 = arith.index_cast %13 : i32 to index
      %c0 = arith.constant 0 : index
      %15 = vector.load %arg2[%14, %c0] : memref<128x128xf32, #tpu.memory_space<vmem>>, vector<128x128xf32>
      %16 = arith.index_cast %13 : i32 to index
      %c0_8 = arith.constant 0 : index
      %17 = vector.load %arg3[%16, %c0_8] : memref<128x128xf32, #tpu.memory_space<vmem>>, vector<128x128xf32>
      %18 = arith.subf %15, %17 : vector<128x128xf32>
      %19 = arith.mulf %18, %18 : vector<128x128xf32>
      %20 = vector.broadcast %cst : f32 to vector<128x128xf32>
      %21 = arith.addf %19, %20 : vector<128x128xf32>
      %22 = math.sqrt %21 : vector<128x128xf32>
      %23 = vector.shape_cast %22 : vector<128x128xf32> to vector<16x8x128xf32>
      %cst_9 = arith.constant dense<0.000000e+00> : vector<8x128xf32>
      %24 = vector.multi_reduction <add>, %23, %cst_9 [0] : vector<16x8x128xf32> to vector<8x128xf32>
      %25 = arith.addf %11, %24 : vector<8x128xf32>
      %c1_i32_10 = arith.constant 1 : i32
      %c0_11 = arith.constant 0 : index
      %c0_12 = arith.constant 0 : index
      %c0_13 = arith.constant 0 : index
      %26 = vector.load %arg4[%c0_11, %c0_12, %c0_13] : memref<1x8x128xf32, #tpu.memory_space<vmem>>, vector<1x8x128xf32>
      %27 = vector.shape_cast %26 : vector<1x8x128xf32> to vector<8x128xf32>
      %28 = arith.addf %27, %25 : vector<8x128xf32>
      %c0_14 = arith.constant 0 : index
      %c0_15 = arith.constant 0 : index
      %c0_16 = arith.constant 0 : index
      %29 = vector.load %arg4[%c0_14, %c0_15, %c0_16] : memref<1x8x128xf32, #tpu.memory_space<vmem>>, vector<1x8x128xf32>
      %30 = vector.shape_cast %29 : vector<1x8x128xf32> to vector<8x128xf32>
      %31 = vector.shape_cast %28 : vector<8x128xf32> to vector<1x8x128xf32>
      tpu.vector_store %arg4[%c0_14, %c0_15, %c0_16], %31 {strides = array<i32>} : memref<1x8x128xf32, #tpu.memory_space<vmem>>, vector<1x8x128xf32>,
    } else {
    }
    %c0_i32_3 = arith.constant 0 : i32
    %8 = arith.cmpi sge, %1, %c0_i32_3 : i32
    %9 = arith.extui %8 : i1 to i32
    %cst_4 = arith.constant 9.99999997E-7 : f32
    %c0_i32_5 = arith.constant 0 : i32
    %10 = arith.cmpi ne, %9, %c0_i32_5 : i32
    scf.if %10 {
      %11 = tpu.iota {dimensions = array<i32: 0>} : vector<128x128xi32>
      %12 = tpu.iota {dimensions = array<i32: 1>} : vector<128x128xi32>
      %c128_i32 = arith.constant 128 : i32
      %13 = vector.broadcast %c128_i32 : i32 to vector<128x128xi32>
      %14 = arith.muli %11, %13 : vector<128x128xi32>
      %15 = arith.addi %14, %12 : vector<128x128xi32>
      %c16384_i32 = arith.constant 16384 : i32
      %16 = arith.muli %1, %c16384_i32 : i32
      %cst_6 = arith.constant 0.000000e+00 : f32
      %17 = vector.broadcast %cst_6 : f32 to vector<8x128xf32>
      %c0_i32_7 = arith.constant 0 : i32
      %c128_i32_8 = arith.constant 128 : i32
      %18 = arith.muli %c0_i32_7, %c128_i32_8 : i32
      %19 = tpu.assume_multiple %18, 128 : i32
      %20 = arith.index_cast %19 : i32 to index
      %c0 = arith.constant 0 : index
      %21 = vector.load %arg2[%20, %c0] : memref<128x128xf32, #tpu.memory_space<vmem>>, vector<128x128xf32>
      %22 = arith.index_cast %19 : i32 to index
      %c0_9 = arith.constant 0 : index
      %23 = vector.load %arg3[%22, %c0_9] : memref<128x128xf32, #tpu.memory_space<vmem>>, vector<128x128xf32>
      %24 = arith.subf %21, %23 : vector<128x128xf32>
      %25 = arith.mulf %24, %24 : vector<128x128xf32>
      %26 = vector.broadcast %cst_4 : f32 to vector<128x128xf32>
      %27 = arith.addf %25, %26 : vector<128x128xf32>
      %28 = math.sqrt %27 : vector<128x128xf32>
      %c128_i32_10 = arith.constant 128 : i32
      %29 = arith.muli %19, %c128_i32_10 : i32
      %30 = arith.addi %16, %29 : i32
      %31 = vector.broadcast %30 : i32 to vector<128x128xi32>
      %32 = arith.addi %31, %15 : vector<128x128xi32>
      %c2048_i32 = arith.constant 2048 : i32
      %33 = vector.broadcast %c2048_i32 : i32 to vector<128x128xi32>
      %34 = arith.cmpi slt, %32, %33 : vector<128x128xi32>
      %cst_11 = arith.constant 0.000000e+00 : f32
      %35 = vector.broadcast %cst_11 : f32 to vector<128x128xf32>
      %36 = arith.select %34, %28, %35 : vector<128x128xi1>, vector<128x128xf32>
      %37 = vector.shape_cast %36 : vector<128x128xf32> to vector<16x8x128xf32>
      %cst_12 = arith.constant dense<0.000000e+00> : vector<8x128xf32>
      %38 = vector.multi_reduction <add>, %37, %cst_12 [0] : vector<16x8x128xf32> to vector<8x128xf32>
      %39 = arith.addf %17, %38 : vector<8x128xf32>
      %c1_i32_13 = arith.constant 1 : i32
      %c0_14 = arith.constant 0 : index
      %c0_15 = arith.constant 0 : index
      %c0_16 = arith.constant 0 : index
      %40 = vector.load %arg4[%c0_14, %c0_15, %c0_16] : memref<1x8x128xf32, #tpu.memory_space<vmem>>, vector<1x8x128xf32>
      %41 = vector.shape_cast %40 : vector<1x8x128xf32> to vector<8x128xf32>
      %42 = arith.addf %41, %39 : vector<8x128xf32>
      %c0_17 = arith.constant 0 : index
      %c0_18 = arith.constant 0 : index
      %c0_19 = arith.constant 0 : index
      %43 = vector.load %arg4[%c0_17, %c0_18, %c0_19] : memref<1x8x128xf32, #tpu.memory_space<vmem>>, vector<1x8x128xf32>
      %44 = vector.shape_cast %43 : vector<1x8x128xf32> to vector<8x128xf32>
      %45 = vector.shape_cast %42 : vector<8x128xf32> to vector<1x8x128xf32>
      tpu.vector_store %arg4[%c0_17, %c0_18, %c0_19], %45 {strides = array<i32>} : memref<1x8x128xf32, #tpu.memory_space<vmem>>, vector<1x8x128xf32>,
    } else {
    }
    return
  }
  func.func @transform_0(%arg0: i32, %arg1: i32) -> (i32, i32) {
    %c1_i32 = arith.constant 1 : i32
    %0 = arith.muli %arg0, %c1_i32 : i32
    %1 = arith.addi %0, %arg1 : i32
    %c0_i32 = arith.constant 0 : i32
    %2 = arith.minsi %1, %c0_i32 : i32
    %c0_i32_0 = arith.constant 0 : i32
    %c0_i32_1 = arith.constant 0 : i32
    return %2, %c0_i32_0 : i32, i32
  }
  func.func @transform_1(%arg0: i32, %arg1: i32) -> (i32, i32) {
    %c1_i32 = arith.constant 1 : i32
    %0 = arith.muli %arg0, %c1_i32 : i32
    %1 = arith.addi %0, %arg1 : i32
    %c0_i32 = arith.constant 0 : i32
    %2 = arith.minsi %1, %c0_i32 : i32
    %c0_i32_0 = arith.constant 0 : i32
    %c0_i32_1 = arith.constant 0 : i32
    return %2, %c0_i32_0 : i32, i32
  }
  func.func @transform_2(%arg0: i32, %arg1: i32) -> (i32, i32, i32) {
    %c0_i32 = arith.constant 0 : i32
    %c0_i32_0 = arith.constant 0 : i32
    %c0_i32_1 = arith.constant 0 : i32
    return %arg0, %c0_i32, %c0_i32_0 : i32, i32, i32
  }
}

</mosaic_0001>

<bundles_post_ra>
// kernel: tpu_custom_call.1
= control target key start
LH: loop header
LB: loop body
LE: loop exit
PB: predicated region body
PF: predicated region fallthrough
CT: control target
= control target key end

     0   :  { %7 = vsyncpa [#allocation3], 0  ;;  %s1041_s0 = inlined_call_operand.hbm [shape: f32[16,128], index: 0, kind: input, shape index: {}]   ;;  %s1042_s1 = inlined_call_operand.hbm [shape: f32[16,128], index: 1, kind: input, shape index: {}]   ;;  %s1043_s2 = inlined_call_operand.hbm [shape: f32[1,8,128], index: 2, kind: output, shape index: {}]  }
   0x1   :  { %8 = vsyncpa [#allocation6], 0 }
   0x2   :  { %9 = vsyncpa [#allocation4], 0 }
   0x3   :  { %20 = vsyncadd [#allocation3], 1792  ;;  %s735_s9 = smov [#allocation2]  }
   0x4   :  { %s25_s10 = sshll.u32 %s735_s9, 4  ;;  %s26_s10 = int_to_ptr.vmem [resolvable:$true] %s25_s10 }
   0x5   :  { %s677_s11 = scalar_lea.vmem %s26_s10, 256  ;;  %s681_s12 = scalar_lea.vmem %s26_s10, 2048 }
   0x6   :  { %p678_p0 = scmp.ne.s32.totalorder %s26_s10, %s677_s11  ;;  %p682_p1 = scmp.lt.s32.totalorder %s26_s10, %s26_s10 }
   0x7   :  { %p683_p2 = scmp.lt.s32.totalorder %s681_s12, %s677_s11 }
   0x9   :  { %p684_p3 = por %p683_p2, %p682_p1 }
   0xb   :  { %p685_p4 = pnand %p684_p3, %p678_p0 }
   0xd   :  { %688 = shalt.err (!%p685_p4)
}
   0xe   :  { %s736_s13 = smov 128   ;;  %s737_s14 = smov 8  }
   0xf   :  { %31 = dma.hbm_to_vmem [thread:$0]  %s1041_s0, 256, %s26_s10, [#allocation3], %s736_s13, %s736_s13, %s737_s14  }
  0x10   :  { %42 = vsyncadd [#allocation6], 1792  ;;  %s738_s17 = smov [#allocation5]  }
  0x11   :  { %s47_s18 = sshll.u32 %s738_s17, 4  ;;  %s48_s18 = int_to_ptr.vmem [resolvable:$true] %s47_s18 }
  0x12   :  { %s697_s19 = scalar_lea.vmem %s48_s18, 256  ;;  %s701_s20 = scalar_lea.vmem %s48_s18, 2048 }
  0x13   :  { %p698_p5 = scmp.ne.s32.totalorder %s48_s18, %s697_s19  ;;  %p702_p6 = scmp.lt.s32.totalorder %s48_s18, %s48_s18 }
  0x14   :  { %p703_p7 = scmp.lt.s32.totalorder %s701_s20, %s697_s19 }
  0x16   :  { %p704_p8 = por %p703_p7, %p702_p6 }
  0x18   :  { %p705_p9 = pnand %p704_p8, %p698_p5 }
  0x1a   :  { %708 = shalt.err (!%p705_p9)
}
  0x1b   :  { %53 = dma.hbm_to_vmem [thread:$0]  %s1042_s1, 256, %s48_s18, [#allocation6], %s736_s13, %s736_s13, %s737_s14  }
  0x1c   :  { %729 = dma.done.wait [#allocation3], 2048  }
  0x1d   :  { %730 = vsyncadd [#allocation3], 4294965248 }
  0x1e   :  { %731 = dma.done.wait [#allocation6], 2048  }
  0x1f   :  { %732 = vsyncadd [#allocation6], 4294965248  ;;  %v297_v0 = vlaneseq  ;;  %v349_v1 = vld [vmem:[#allocation2] sm:$0xff]  ;;  %v350_v4 = vld [vmem:[#allocation2 + $0x8] sm:$0xff]  ;;  %s739_s0 = smov [#allocation7]  }
  0x20   :  { %v365_v2 = vld [vmem:[#allocation5] sm:$0xff]  ;;  %v366_v5 = vld [vmem:[#allocation5 + $0x8] sm:$0xff]  ;;  %v351_v6 = vld [vmem:[#allocation2 + $0x10] sm:$0xff]  ;;  %s617_s1 = sshll.u32 %s739_s0, 4  ;;  %s618_s1 = int_to_ptr.vmem [resolvable:$true] %s617_s1 }
  0x21   :  { %v298_v3 = vshrl.u32 %v297_v0, 7  ;;  %v367_v7 = vld [vmem:[#allocation5 + $0x10] sm:$0xff]  ;;  %v381_v8 = vsub.f32 %v349_v1, %v365_v2  ;;  %v382_v9 = vsub.f32 %v350_v4, %v366_v5  ;;  %v761_v13 = vand.u32 127, %v297_v0  ;;  %v352_v14 = vld [vmem:[#allocation2 + $0x18] sm:$0xff]  ;;  %v353_v23 = vld [vmem:[#allocation2 + $0x20] sm:$0xff]  ;;  %s709_s23 = scalar_lea.vmem %s618_s1, 128  ;;  %p714_p11 = scmp.lt.s32.totalorder %s618_s1, %s618_s1 }
  0x22   :  { %v368_v15 = vld [vmem:[#allocation5 + $0x18] sm:$0xff]  ;;  %v383_v19 = vsub.f32 %v351_v6, %v367_v7  ;;  %v369_v24 = vld [vmem:[#allocation5 + $0x20] sm:$0xff]  ;;  %v354_v34 = vld [vmem:[#allocation2 + $0x28] sm:$0xff]  ;;  %p710_p10 = scmp.ne.s32.totalorder %s618_s1, %s709_s23  ;;  %p715_p12 = scmp.lt.s32.totalorder %s709_s23, %s709_s23 }
  0x23   :  { %v299_v10 = vadd.s32 8, %v298_v3  ;;  %v300_v11 = vadd.s32 16, %v298_v3  ;;  %v301_v12 = vadd.s32 24, %v298_v3  ;;  %v302_v16 = vadd.s32 32, %v298_v3  ;;  %v370_v35 = vld [vmem:[#allocation5 + $0x28] sm:$0xff]  ;;  %v355_v42 = vld [vmem:[#allocation2 + $0x30] sm:$0xff] }
  0x24   :  { %v303_v17 = vadd.s32 40, %v298_v3  ;;  %v763_v18 = vadd.s32 48, %v298_v3  ;;  %v765_v20 = vadd.s32 56, %v298_v3  ;;  %v767_v21 = vadd.s32 64, %v298_v3  ;;  %v371_v43 = vld [vmem:[#allocation5 + $0x30] sm:$0xff]  ;;  %v356_v53 = vld [vmem:[#allocation2 + $0x38] sm:$0xff]  ;;  %p716_p13 = por %p715_p12, %p714_p11 }
  0x25   :  { %v769_v22 = vadd.s32 72, %v298_v3  ;;  %v397_v25 = vmul.f32 %v381_v8, %v381_v8  ;;  %v771_v26 = vadd.s32 80, %v298_v3  ;;  %v773_v27 = vadd.s32 88, %v298_v3  ;;  %v372_v54 = vld [vmem:[#allocation5 + $0x38] sm:$0xff]  ;;  %v357_v56 = vld [vmem:[#allocation2 + $0x40] sm:$0xff]  ;;  %v358_v63 = vld [vmem:[#allocation2 + $0x48] sm:$0xff] }
  0x26   :  { %v384_v28 = vsub.f32 %v352_v14, %v368_v15  ;;  %v398_v29 = vmul.f32 %v382_v9, %v382_v9  ;;  %v775_v30 = vadd.s32 96, %v298_v3  ;;  %v777_v31 = vadd.s32 104, %v298_v3  ;;  %v359_v0 = vld [vmem:[#allocation2 + $0x50] sm:$0xff]  ;;  %v373_v1 = vld [vmem:[#allocation5 + $0x40] sm:$0xff]  ;;  %v360_v2 = vld [vmem:[#allocation2 + $0x58] sm:$0xff]  ;;  %p717_p0 = pnand %p716_p13, %p710_p10 }
  0x27   :  { %v316_v32 = vmul.u32 128, %v298_v3  ;;  %v317_v33 = vmul.u32 128, %v299_v10  ;;  %v779_v36 = vadd.s32 112, %v298_v3  ;;  %v385_v38 = vsub.f32 %v353_v23, %v369_v24  ;;  %v362_v4 = vld [vmem:[#allocation2 + $0x68] sm:$0xff]  ;;  %v363_v14 = vld [vmem:[#allocation2 + $0x70] sm:$0xff] }
  0x28   :  { %v318_v37 = vmul.u32 128, %v300_v11  ;;  %v399_v39 = vmul.f32 %v383_v19, %v383_v19  ;;  %v781_v40 = vadd.s32 120, %v298_v3  ;;  %v319_v41 = vmul.u32 128, %v301_v12  ;;  %v361_v3 = vld [vmem:[#allocation2 + $0x60] sm:$0xff]  ;;  %v374_v5 = vld [vmem:[#allocation5 + $0x48] sm:$0xff]  ;;  %v375_v15 = vld [vmem:[#allocation5 + $0x50] sm:$0xff] }
  0x29   :  { %v783_v44 = vadd.f32 1e-06, %v397_v25  ;;  %v320_v45 = vmul.u32 128, %v302_v16  ;;  %v386_v46 = vsub.f32 %v354_v34, %v370_v35  ;;  %v400_v47 = vmul.f32 %v384_v28, %v384_v28  ;;  %v376_v16 = vld [vmem:[#allocation5 + $0x58] sm:$0xff]  ;;  %v379_v19 = vld [vmem:[#allocation5 + $0x70] sm:$0xff] }
  0x2a   :  { %v785_v48 = vadd.f32 1e-06, %v398_v29  ;;  %v321_v49 = vmul.u32 128, %v303_v17  ;;  %v322_v50 = vmul.u32 128, %v763_v18  ;;  %v789_v51 = vadd.s32 %v316_v32, %v761_v13  ;;  %v377_v17 = vld [vmem:[#allocation5 + $0x60] sm:$0xff]  ;;  %v378_v18 = vld [vmem:[#allocation5 + $0x68] sm:$0xff] }
  0x2b   :  { %v792_v52 = vadd.s32 %v317_v33, %v761_v13  ;;  %v795_v55 = vadd.s32 %v318_v37, %v761_v13  ;;  %v387_v57 = vsub.f32 %v355_v42, %v371_v43  ;;  %v401_v58 = vmul.f32 %v385_v38, %v385_v38  ;;  %v380_v28 = vld [vmem:[#allocation5 + $0x78] sm:$0xff] }
  0x2c   :  { %v797_v59 = vadd.f32 1e-06, %v399_v39  ;;  %v323_v60 = vmul.u32 128, %v765_v20  ;;  %v324_v61 = vmul.u32 128, %v767_v21  ;;  %v802_v62 = vadd.s32 %v319_v41, %v761_v13 }
  0x2d   :  { %637 = vrsqrt.f32 %v783_v44  ;;  %v388_v6 = vsub.f32 %v356_v53, %v372_v54  ;;  %v402_v7 = vmul.f32 %v386_v46, %v386_v46  ;;  %v805_v8 = vadd.f32 1e-06, %v400_v47 }
  0x2e   :  { %639 = vrsqrt.f32 %v785_v48  ;;  %v325_v9 = vmul.u32 128, %v769_v22  ;;  %v326_v10 = vmul.u32 128, %v771_v26  ;;  %v811_v11 = vadd.s32 %v320_v45, %v761_v13  ;;  %v364_v26 = vld [vmem:[#allocation2 + $0x78] sm:$0xff] }
  0x2f   :  { %v814_v12 = vadd.s32 %v321_v49, %v761_v13  ;;  %v389_v20 = vsub.f32 %v357_v56, %v373_v1  ;;  %v403_v21 = vmul.f32 %v387_v57, %v387_v57  ;;  %v816_v23 = vadd.f32 1e-06, %v401_v58 }
  0x30   :  { %641 = vrsqrt.f32 %v797_v59  ;;  %v327_v22 = vmul.u32 128, %v773_v27  ;;  %v328_v24 = vmul.u32 128, %v775_v30  ;;  %v822_v25 = vadd.s32 %v322_v50, %v761_v13 }
  0x31   :  { %v390_v29 = vsub.f32 %v358_v63, %v374_v5  ;;  %v391_v32 = vsub.f32 %v359_v0, %v375_v15  ;;  %v404_v33 = vmul.f32 %v388_v6, %v388_v6  ;;  %v824_v34 = vadd.f32 1e-06, %v402_v7 }
  0x32   :  { %643 = vrsqrt.f32 %v805_v8  ;;  %v392_v35 = vsub.f32 %v360_v2, %v376_v16  ;;  %v393_v37 = vsub.f32 %v361_v3, %v377_v17  ;;  %v394_v38 = vsub.f32 %v362_v4, %v378_v18 }
  0x33   :  { %v395_v39 = vsub.f32 %v363_v14, %v379_v19  ;;  %v396_v41 = vsub.f32 %v364_v26, %v380_v28  ;;  %v405_v27 = vmul.f32 %v389_v20, %v389_v20  ;;  %v827_v42 = vadd.f32 1e-06, %v403_v21 }
  0x34   :  { %645 = vrsqrt.f32 %v816_v23  ;;  %v329_v30 = vmul.u32 128, %v777_v31  ;;  %v330_v43 = vmul.u32 128, %v779_v36  ;;  %v833_v45 = vadd.s32 %v323_v60, %v761_v13 }
  0x35   :  { %v836_v46 = vadd.s32 %v324_v61, %v761_v13  ;;  %v406_v47 = vmul.f32 %v390_v29, %v390_v29  ;;  %v407_v49 = vmul.f32 %v391_v32, %v391_v32  ;;  %v838_v50 = vadd.f32 1e-06, %v404_v33 }
  0x36   :  { %647 = vrsqrt.f32 %v824_v34  ;;  %v842_v53 = vadd.s32 %v325_v9, %v761_v13  ;;  %v408_v54 = vmul.f32 %v392_v35, %v392_v35  ;;  %v409_v56 = vmul.f32 %v393_v37, %v393_v37 }
  0x37   :  { %v410_v31 = vmul.f32 %v394_v38, %v394_v38  ;;  %v411_v57 = vmul.f32 %v395_v39, %v395_v39  ;;  %v412_v36 = vmul.f32 %v396_v41, %v396_v41  ;;  %v844_v58 = vadd.f32 1e-06, %v405_v27 }
  0x38   :  { %649 = vrsqrt.f32 %v827_v42  ;;  %v331_v60 = vmul.u32 128, %v781_v40  ;;  %v849_v61 = vadd.s32 %v326_v10, %v761_v13  ;;  %v852_v63 = vadd.s32 %v327_v22, %v761_v13 }
  0x39   :  { %v855_v0 = vadd.s32 %v328_v24, %v761_v13  ;;  %v858_v2 = vadd.s32 %v329_v30, %v761_v13  ;;  %v860_v3 = vadd.f32 1e-06, %v406_v47  ;;  %v862_v4 = vadd.f32 1e-06, %v407_v49 }
  0x3a   :  { %v638_v1 = vpop.eup %637  ;;  %651 = vrsqrt.f32 %v838_v50  ;;  %v866_v6 = vadd.s32 %v330_v43, %v761_v13  ;;  %v868_v7 = vadd.f32 1e-06, %v408_v54  ;;  %v870_v9 = vadd.f32 1e-06, %v409_v56 }
  0x3b   :  { %v640_v5 = vpop.eup %639  ;;  %v872_v10 = vadd.f32 1e-06, %v410_v31  ;;  %v874_v14 = vadd.f32 1e-06, %v411_v57  ;;  %v876_v15 = vadd.f32 1e-06, %v412_v36  ;;  %653 = vrsqrt.f32 %v844_v58 }
  0x3c   :  { %vm431_vm0 = vcmp.eq.f32.partialorder %v783_v44, inf  ;;  %vm433_vm1 = vcmp.eq.f32.partialorder %v783_v44, 0.0  ;;  %v434_v17 = vand.u32 2147483648, %v783_v44  ;;  %vm438_vm2 = vcmp.eq.f32.partialorder %v785_v48, inf }
  0x3d   :  { %v642_v16 = vpop.eup %641  ;;  %vm440_vm3 = vcmp.eq.f32.partialorder %v785_v48, 0.0  ;;  %v430_v18 = vmul.f32 %v638_v1, %v783_v44  ;;  %v437_v19 = vmul.f32 %v640_v5, %v785_v48  ;;  %v441_v20 = vand.u32 2147483648, %v785_v48 }
  0x3e   :  { %655 = vrsqrt.f32 %v860_v3  ;;  %vm445_vm4 = vcmp.eq.f32.partialorder %v797_v59, inf  ;;  %vm447_vm5 = vcmp.eq.f32.partialorder %v797_v59, 0.0  ;;  %v448_v22 = vand.u32 2147483648, %v797_v59 }
  0x3f   :  { %v644_v21 = vpop.eup %643  ;;  %vm452_vm6 = vcmp.eq.f32.partialorder %v805_v8, inf  ;;  %v444_v24 = vmul.f32 %v642_v16, %v797_v59  ;;  %vm454_vm7 = vcmp.eq.f32.partialorder %v805_v8, 0.0  ;;  %v455_v26 = vand.u32 2147483648, %v805_v8 }
  0x40   :  { %657 = vrsqrt.f32 %v862_v4  ;;  %vm459_vm8 = vcmp.eq.f32.partialorder %v816_v23, inf  ;;  %vm461_vm9 = vcmp.eq.f32.partialorder %v816_v23, 0.0  ;;  %v462_v29 = vand.u32 2147483648, %v816_v23 }
  0x41   :  { %v646_v28 = vpop.eup %645  ;;  %vm466_vm10 = vcmp.eq.f32.partialorder %v824_v34, inf  ;;  %v432_v32 = vsel %vm431_vm0, %v783_v44, %v430_v18  ;;  %v439_v33 = vsel %vm438_vm2, %v785_v48, %v437_v19  ;;  %v451_v35 = vmul.f32 %v644_v21, %v805_v8 }
  0x42   :  { %659 = vrsqrt.f32 %v868_v7  ;;  %vm468_vm11 = vcmp.eq.f32.partialorder %v824_v34, 0.0  ;;  %v469_v38 = vand.u32 2147483648, %v824_v34  ;;  %vm473_vm12 = vcmp.eq.f32.partialorder %v827_v42, inf }
  0x43   :  { %v648_v37 = vpop.eup %647  ;;  %v476_v39 = vand.u32 2147483648, %v827_v42  ;;  %v446_v41 = vsel %vm445_vm4, %v797_v59, %v444_v24  ;;  %v458_v27 = vmul.f32 %v646_v28, %v816_v23  ;;  %vm475_vm13 = vcmp.eq.f32.partialorder %v827_v42, 0.0 }
  0x44   :  { %vm480_vm14 = vcmp.eq.f32.partialorder %v838_v50, inf  ;;  %661 = vrsqrt.f32 %v870_v9  ;;  %v435_v43 = vsel %vm433_vm1, %v434_v17, %v432_v32  ;;  %v442_v47 = vsel %vm440_vm3, %v441_v20, %v439_v33 }
  0x45   :  { %v650_v30 = vpop.eup %649  ;;  %vm560_vm15 = vcmp.lt.s32.totalorder %v789_v51, 2048  ;;  %vm561_vm0 = vcmp.lt.s32.totalorder %v792_v52, 2048  ;;  %v453_v49 = vsel %vm452_vm6, %v805_v8, %v451_v35  ;;  %v465_v54 = vmul.f32 %v648_v37, %v824_v34 }
  0x46   :  { %vm482_vm2 = vcmp.eq.f32.partialorder %v838_v50, 0.0  ;;  %v483_v56 = vand.u32 2147483648, %v838_v50  ;;  %663 = vrsqrt.f32 %v872_v10  ;;  %v449_v48 = vsel %vm447_vm5, %v448_v22, %v446_v41 }
  0x47   :  { %v652_v44 = vpop.eup %651  ;;  %vm487_vm1 = vcmp.eq.f32.partialorder %v844_v58, inf  ;;  %665 = vrsqrt.f32 %v874_v14  ;;  %vm562_vm3 = vcmp.lt.s32.totalorder %v795_v55, 2048  ;;  %v460_v51 = vsel %vm459_vm8, %v816_v23, %v458_v27 }
  0x48   :  { %v472_v52 = vmul.f32 %v650_v30, %v827_v42  ;;  %vm489_vm4 = vcmp.eq.f32.partialorder %v844_v58, 0.0  ;;  %v576_v31 = vsel %vm560_vm15, %v435_v43, 0.0  ;;  %v577_v57 = vsel %vm561_vm0, %v442_v47, 0.0  ;;  %v654_v36 = vpop.eup %653 }
  0x49   :  { %v456_v59 = vsel %vm454_vm7, %v455_v26, %v453_v49  ;;  %v490_v1 = vand.u32 2147483648, %v844_v58  ;;  %vm494_vm5 = vcmp.eq.f32.partialorder %v860_v3, inf  ;;  %vm563_vm6 = vcmp.lt.s32.totalorder %v802_v62, 2048 }
  0x4a   :  { %v467_v55 = vsel %vm466_vm10, %v824_v34, %v465_v54  ;;  %v479_v5 = vmul.f32 %v652_v44, %v838_v50  ;;  %667 = vrsqrt.f32 %v876_v15  ;;  %v578_v16 = vsel %vm562_vm3, %v449_v48, 0.0 }
  0x4b   :  { %v656_v17 = vpop.eup %655  ;;  %v463_v8 = vsel %vm461_vm9, %v462_v29, %v460_v51  ;;  %vm496_vm7 = vcmp.eq.f32.partialorder %v860_v3, 0.0  ;;  %vm564_vm8 = vcmp.lt.s32.totalorder %v811_v11, 2048  ;;  %v592_v18 = vadd.f32 %v577_v57, %v576_v31 }
  0x4c   :  { %v474_v62 = vsel %vm473_vm12, %v827_v42, %v472_v52  ;;  %v486_v19 = vmul.f32 %v654_v36, %v844_v58  ;;  %v497_v20 = vand.u32 2147483648, %v860_v3  ;;  %v579_v21 = vsel %vm563_vm6, %v456_v59, 0.0 }
  0x4d   :  { %v658_v22 = vpop.eup %657  ;;  %v470_v24 = vsel %vm468_vm11, %v469_v38, %v467_v55  ;;  %vm501_vm9 = vcmp.eq.f32.partialorder %v862_v4, inf  ;;  %vm565_vm10 = vcmp.lt.s32.totalorder %v814_v12, 2048  ;;  %v593_v23 = vadd.f32 %v592_v18, %v578_v16 }
  0x4e   :  { %v481_v11 = vsel %vm480_vm14, %v838_v50, %v479_v5  ;;  %v493_v26 = vmul.f32 %v656_v17, %v860_v3  ;;  %vm503_vm12 = vcmp.eq.f32.partialorder %v862_v4, 0.0  ;;  %v580_v28 = vsel %vm564_vm8, %v463_v8, 0.0 }
  0x4f   :  { %v660_v29 = vpop.eup %659  ;;  %v477_v32 = vsel %vm475_vm13, %v476_v39, %v474_v62  ;;  %v504_v34 = vand.u32 2147483648, %v862_v4  ;;  %vm566_vm11 = vcmp.lt.s32.totalorder %v822_v25, 2048  ;;  %v594_v33 = vadd.f32 %v593_v23, %v579_v21 }
  0x50   :  { %v488_v12 = vsel %vm487_vm1, %v844_v58, %v486_v19  ;;  %v500_v35 = vmul.f32 %v658_v22, %v862_v4  ;;  %vm508_vm14 = vcmp.eq.f32.partialorder %v868_v7, inf  ;;  %v581_v37 = vsel %vm565_vm10, %v470_v24, 0.0 }
  0x51   :  { %v662_v38 = vpop.eup %661  ;;  %v484_v41 = vsel %vm482_vm2, %v483_v56, %v481_v11  ;;  %vm510_vm13 = vcmp.eq.f32.partialorder %v868_v7, 0.0  ;;  %vm567_vm15 = vcmp.lt.s32.totalorder %v833_v45, 2048  ;;  %v595_v42 = vadd.f32 %v594_v33, %v580_v28 }
  0x52   :  { %v495_v25 = vsel %vm494_vm5, %v860_v3, %v493_v26  ;;  %v507_v39 = vmul.f32 %v660_v29, %v868_v7  ;;  %v511_v27 = vand.u32 2147483648, %v868_v7  ;;  %v582_v30 = vsel %vm566_vm11, %v477_v32, 0.0 }
  0x53   :  { %v664_v43 = vpop.eup %663  ;;  %v491_v47 = vsel %vm489_vm4, %v490_v1, %v488_v12  ;;  %vm515_vm0 = vcmp.eq.f32.partialorder %v870_v9, inf  ;;  %vm568_vm2 = vcmp.lt.s32.totalorder %v836_v46, 2048  ;;  %v596_v50 = vadd.f32 %v595_v42, %v581_v37 }
  0x54   :  { %v666_v45 = vpop.eup %665  ;;  %v502_v49 = vsel %vm501_vm9, %v862_v4, %v500_v35  ;;  %v514_v54 = vmul.f32 %v662_v38, %v870_v9  ;;  %vm517_vm1 = vcmp.eq.f32.partialorder %v870_v9, 0.0  ;;  %v583_v56 = vsel %vm567_vm15, %v484_v41, 0.0 }
  0x55   :  { %v498_v44 = vsel %vm496_vm7, %v497_v20, %v495_v25  ;;  %v518_v58 = vand.u32 2147483648, %v870_v9  ;;  %vm569_vm3 = vcmp.lt.s32.totalorder %v842_v53, 2048  ;;  %v597_v48 = vadd.f32 %v596_v50, %v582_v30 }
  0x56   :  { %v509_v46 = vsel %vm508_vm14, %v868_v7, %v507_v39  ;;  %v521_v51 = vmul.f32 %v664_v43, %v872_v10  ;;  %vm522_vm4 = vcmp.eq.f32.partialorder %v872_v10, inf  ;;  %v584_v52 = vsel %vm568_vm2, %v491_v47, 0.0 }
  0x57   :  { %v668_v31 = vpop.eup %667  ;;  %v505_v57 = vsel %vm503_vm12, %v504_v34, %v502_v49  ;;  %vm524_vm5 = vcmp.eq.f32.partialorder %v872_v10, 0.0  ;;  %vm570_vm6 = vcmp.lt.s32.totalorder %v849_v61, 2048  ;;  %v598_v3 = vadd.f32 %v597_v48, %v583_v56 }
  0x58   :  { %v516_v53 = vsel %vm515_vm0, %v870_v9, %v514_v54  ;;  %v525_v36 = vand.u32 2147483648, %v872_v10  ;;  %v528_v59 = vmul.f32 %v666_v45, %v874_v14  ;;  %v585_v1 = vsel %vm569_vm3, %v498_v44, 0.0 }
  0x59   :  { %v512_v55 = vsel %vm510_vm13, %v511_v27, %v509_v46  ;;  %vm529_vm7 = vcmp.eq.f32.partialorder %v874_v14, inf  ;;  %vm571_vm8 = vcmp.lt.s32.totalorder %v852_v63, 2048  ;;  %v599_v4 = vadd.f32 %v598_v3, %v584_v52 }
  0x5a   :  { %v523_v61 = vsel %vm522_vm4, %v872_v10, %v521_v51  ;;  %v532_v5 = vand.u32 2147483648, %v874_v14  ;;  %v535_v16 = vmul.f32 %v668_v31, %v876_v15  ;;  %v586_v17 = vsel %vm570_vm6, %v505_v57, 0.0 }
  0x5b   :  { %v519_v8 = vsel %vm517_vm1, %v518_v58, %v516_v53  ;;  %vm536_vm9 = vcmp.eq.f32.partialorder %v876_v15, inf  ;;  %vm572_vm10 = vcmp.lt.s32.totalorder %v855_v0, 2048  ;;  %v600_v7 = vadd.f32 %v599_v4, %v585_v1 }
  0x5c   :  { %v347_v63 = vadd.s32 %v331_v60, %v761_v13  ;;  %v530_v18 = vsel %vm529_vm7, %v874_v14, %v528_v59  ;;  %vm531_vm12 = vcmp.eq.f32.partialorder %v874_v14, 0.0  ;;  %v587_v62 = vsel %vm571_vm8, %v512_v55, 0.0 }
  0x5d   :  { %v526_v19 = vsel %vm524_vm5, %v525_v36, %v523_v61  ;;  %v539_v9 = vand.u32 2147483648, %v876_v15  ;;  %vm573_vm11 = vcmp.lt.s32.totalorder %v858_v2, 2048  ;;  %v601_v20 = vadd.f32 %v600_v7, %v586_v17 }
  0x5e   :  { %v537_v0 = vsel %vm536_vm9, %v876_v15, %v535_v16  ;;  %vm538_vm14 = vcmp.eq.f32.partialorder %v876_v15, 0.0  ;;  %v588_v21 = vsel %vm572_vm10, %v519_v8, 0.0  ;;  %v533_v40 = vsel %vm531_vm12, %v532_v5, %v530_v18 }
  0x5f   :  { %vm574_vm13 = vcmp.lt.s32.totalorder %v866_v6, 2048  ;;  %v602_v13 = vadd.f32 %v601_v20, %v587_v62  ;;  %v589_v60 = vsel %vm573_vm11, %v526_v19, 0.0  ;;  %v540_v14 = vsel %vm538_vm14, %v539_v9, %v537_v0 }
  0x60   :  { %vm575_vm15 = vcmp.lt.s32.totalorder %v347_v63, 2048  ;;  %v590_v10 = vsel %vm574_vm13, %v533_v40, 0.0 }
  0x61   :  { %v603_v22 = vadd.f32 %v602_v13, %v588_v21  ;;  %v591_v23 = vsel %vm575_vm15, %v540_v14, 0.0 }
  0x63   :  { %v604_v24 = vadd.f32 %v603_v22, %v589_v60 }
  0x65   :  { %v605_v11 = vadd.f32 %v604_v24, %v590_v10 }
  0x67   :  { %v606_v2 = vadd.f32 %v605_v11, %v591_v23 }
  0x69   :  { %610 = vst [vmem:[#allocation7] sm:$0xff] %v606_v2 }
  0x6a   :  { %720 = shalt.err (!%p717_p0)
}
  0x6b   :  { %620 = dma.vmem_to_hbm [thread:$0]  %s618_s1, 128, %s1043_s2, [#allocation4]  }
  0x6c   :  { %733 = dma.done.wait [#allocation4], 128  }
  0x6d   :  { %734 = vsyncadd [#allocation4], 4294967168 }
  0x6e   :  { %624 = vsyncpa [#allocation3], 1 }
  0x6f   :  { %625 = vsyncpa [#allocation6], 1 }
  0x70   :  { %626 = vsyncpa [#allocation4], 1 }

</bundles_post_ra>
